<compile_context>
chip_gen: v5e
topology: v5e:2x2
jax: 0.10.0
libtpu: 0.0.40
codegen_flags: <defaults>
</compile_context>

<pallas_src>
import functools
from typing import NamedTuple, Optional

import jax
import jax.numpy as jnp
from jax.experimental import pallas as pl
from jax.experimental.pallas import tpu as pltpu


def _swiglu_hidden(hidden_features: int) -> int:
    # Mirrors: hidden_features = (int(hidden_features * 2 / 3) + 7) // 8 * 8
    return (int(hidden_features * 2 / 3) + 7) // 8 * 8


def _round_up(x: int, m: int) -> int:
    return (x + m - 1) // m * m


def _tpu_info():
    """Best-effort (vmem_capacity_bytes, tensorcores_per_chip) query."""
    vmem = None
    cores = 1
    try:
        vmem = int(pltpu.get_tpu_info().vmem_capacity_bytes)
    except Exception:
        vmem = None
    kind = ""
    try:
        kind = jax.devices()[0].device_kind.lower()
    except Exception:
        kind = ""
    if "v7" in kind or "tpu7" in kind:
        cores = 2
        if vmem is None:
            vmem = 64 * 1024 * 1024
    elif ("v5" in kind) or ("v6" in kind):
        if vmem is None:
            vmem = 128 * 1024 * 1024
    if vmem is None:
        # Unknown chip: assume the small-VMEM case so we always compile.
        vmem = 64 * 1024 * 1024
    return vmem, cores


class SwiGLUPlan(NamedTuple):
    in_features: int
    hidden: int
    out_features: int
    tm: int            # max row tile (per-call tile is min(tm, padded m))
    th: int            # hidden (reduction) tile, multiple of 128
    h_pad: int         # padded hidden size (multiple of th)
    out_pad: int       # padded out size (multiple of 128, lane-dense stores)
    compute_dtype: Optional[jnp.dtype]
    vmem_limit_bytes: int
    cores_per_chip: int


def make_swiglu_plan(in_features, hidden, out_features, dtype,
                     *, tm=None, th=None, compute_dtype=None):
    """Pick tiles / padding once per (model dims, dtype, chip). Call at init."""
    vmem_bytes, cores = _tpu_info()
    big_vmem = vmem_bytes >= 100 * 1024 * 1024          # v5e/v6e: 128 MiB; v7x: 64 MiB

    io_itemsize = jnp.dtype(dtype).itemsize
    w_dtype = compute_dtype if compute_dtype is not None else dtype
    w_itemsize = jnp.dtype(w_dtype).itemsize

    out_pad = _round_up(out_features, 128)

    # Hidden (reduction) tile: lane aligned. Larger on 128 MiB parts.
    if th is None:
        th = 1024 if big_vmem else (512 if w_itemsize <= 2 else 256)
    th = max(128, _round_up(min(th, _round_up(hidden, 128)), 128))

    # Row tile: big enough on v6e to get above the HBM roofline for streamed
    # weights (~2*tm FLOP/byte), conservative on 64 MiB v7x.
    if tm is None:
        tm = 512 if big_vmem else 256
    tm = max(8, _round_up(tm, 8))

    vmem_limit = min(vmem_bytes * 3 // 4, 112 * 1024 * 1024)  # 96 MiB / 48 MiB
    budget = int(vmem_limit * 0.9)                            # compiler headroom

    def footprint(tm_, th_):
        # Double-buffered streamed weight blocks + x/out blocks + f32 acc.
        w_stream = 2 * (in_features * 2 * th_ + th_ * out_pad) * w_itemsize
        x_blk = 2 * tm_ * in_features * w_itemsize
        o_blk = 2 * tm_ * out_pad * io_itemsize
        acc = tm_ * out_pad * 4
        return w_stream + x_blk + o_blk + acc

    # Shrink th, then tm, until the working set fits (v7x / f32 / wide-out guard).
    while footprint(tm, th) > budget and th > 128:
        th = max(128, _round_up(th // 2, 128))
    while footprint(tm, th) > budget and tm > 8:
        tm = max(8, _round_up(tm // 2, 8))

    h_pad = _round_up(hidden, th)

    return SwiGLUPlan(in_features=in_features, hidden=hidden,
                      out_features=out_features, tm=tm, th=th,
                      h_pad=h_pad, out_pad=out_pad,
                      compute_dtype=compute_dtype,
                      vmem_limit_bytes=int(vmem_limit),
                      cores_per_chip=cores)


def pack_swiglu_weights(w1, w2, plan: SwiGLUPlan):
    """One-time weight packing (hoist out of the forward path!).

    Splits fc1 into gate/value halves, zero-pads hidden/out to the tile grid,
    and interleaves the two halves per hidden tile so each grid step streams a
    single fused (in, 2*th) block: [gate_tile_j | value_tile_j].
    Zero padding is exact: silu(0)*0 == 0 and zero w2 rows/cols add nothing.
    """
    in_features, hidden = plan.in_features, plan.hidden
    th, h_pad, out_pad = plan.th, plan.h_pad, plan.out_pad
    assert w1.shape == (in_features, 2 * hidden)
    assert w2.shape == (hidden, plan.out_features)

    w1a = jnp.pad(w1[:, :hidden], ((0, 0), (0, h_pad - hidden)))
    w1b = jnp.pad(w1[:, hidden:], ((0, 0), (0, h_pad - hidden)))
    n_h = h_pad // th
    w1_packed = jnp.concatenate(
        [w1a.reshape(in_features, n_h, th), w1b.reshape(in_features, n_h, th)],
        axis=2).reshape(in_features, n_h * 2 * th)

    w2_packed = jnp.pad(w2, ((0, h_pad - hidden), (0, out_pad - plan.out_features)))

    if plan.compute_dtype is not None:
        w1_packed = w1_packed.astype(plan.compute_dtype)
        w2_packed = w2_packed.astype(plan.compute_dtype)
    return w1_packed, w2_packed


def swiglu_ffn_kernel(x_ref, w1_ref, w2_ref, o_ref, acc_ref, *, th):
    # x_ref  : (tm, in)         token tile (same for every hidden block j)
    # w1_ref : (in, 2*th)       fused [gate|value] fc1 weight, hidden tile j
    # w2_ref : (th, out_pad)    fc2 weight tile for hidden block j
    # o_ref  : (tm, out_pad)    output tile (written once, on the last j)
    # acc_ref: (tm, out_pad)    f32 accumulator scratch (persists across j)
    j = pl.program_id(1)

    # One MXU pass of x per step; split at the 128-aligned th boundary (free).
    h = jnp.dot(x_ref[...], w1_ref[...], preferred_element_type=jnp.float32)
    a = h[:, :th]
    b = h[:, th:]
    gated = (a * jax.nn.sigmoid(a)) * b                       # SwiGLU in f32

    contrib = jnp.dot(gated.astype(w2_ref.dtype), w2_ref[...],
                      preferred_element_type=jnp.float32)

    # Fold the init into the first step: no zero-fill store, no extra acc read.
    @pl.when(j == 0)
    def _():
        acc_ref[...] = contrib

    @pl.when(j > 0)
    def _():
        acc_ref[...] += contrib

    @pl.when(j == pl.num_programs(1) - 1)
    def _():
        o_ref[...] = acc_ref[...].astype(o_ref.dtype)


def swiglu_ffn_apply(x, w1_packed, w2_packed, plan: SwiGLUPlan):
    """Hot path: only activation padding + pallas_call (weights pre-packed)."""
    orig_shape = x.shape
    in_features = plan.in_features
    assert orig_shape[-1] == in_features
    th, h_pad, out_pad = plan.th, plan.h_pad, plan.out_pad
    n_h = h_pad // th
    out_dtype = x.dtype

    xm = x.reshape(-1, in_features)
    if plan.compute_dtype is not None:
        xm = xm.astype(plan.compute_dtype)
    m = xm.shape[0]

    # Row tile: multiple of 8, capped at the padded token count.
    m_rows = _round_up(m, 8)
    tm = min(plan.tm, m_rows)
    # v7x (2 TensorCores): make sure the "parallel" M axis has >= 2 blocks.
    if plan.cores_per_chip >= 2 and m_rows > 8 and tm == m_rows:
        tm = max(8, _round_up((m_rows + 1) // 2, 8))
    m_pad = _round_up(m, tm)
    m_blocks = m_pad // tm

    xm_p = jnp.pad(xm, ((0, m_pad - m), (0, 0)))

    grid = (m_blocks, n_h)

    x_item = jnp.dtype(xm_p.dtype).itemsize
    w_item = jnp.dtype(w1_packed.dtype).itemsize
    o_item = jnp.dtype(out_dtype).itemsize
    flops = 2 * m_pad * in_features * (2 * h_pad) + 2 * m_pad * h_pad * out_pad
    # Weights are streamed once per M-block (honest estimate).
    bytes_accessed = (xm_p.size * x_item
                      + m_blocks * (w1_packed.size + w2_packed.size) * w_item
                      + m_pad * out_pad * o_item)

    kernel = functools.partial(swiglu_ffn_kernel, th=th)

    # NOTE: on v7x one could pass pipeline_mode=pl.Buffered(1) on the x/out
    # specs (they only change with the outer i axis) to reclaim a few MiB of
    # VMEM; kept default-buffered here for portability.
    out = pl.pallas_call(
        kernel,
        out_shape=jax.ShapeDtypeStruct((m_pad, out_pad), out_dtype),
        grid=grid,
        in_specs=[
            pl.BlockSpec((tm, in_features), lambda i, j: (i, 0)),
            pl.BlockSpec((in_features, 2 * th), lambda i, j: (0, j)),
            pl.BlockSpec((th, out_pad), lambda i, j: (j, 0)),
        ],
        out_specs=pl.BlockSpec((tm, out_pad), lambda i, j: (i, 0)),
        scratch_shapes=[pltpu.VMEM((tm, out_pad), jnp.float32)],
        compiler_params=pltpu.CompilerParams(
            dimension_semantics=("parallel", "arbitrary"),
            vmem_limit_bytes=plan.vmem_limit_bytes),
        cost_estimate=pl.CostEstimate(
            flops=flops,
            transcendentals=m_pad * h_pad,
            bytes_accessed=bytes_accessed),
    )(xm_p, w1_packed, w2_packed)

    out = out[:m, :plan.out_features]
    return out.reshape(*orig_shape[:-1], plan.out_features)


def swiglu_ffn_fused(x, w1, w2, *, tm=None, th=None, compute_dtype=None):
    """Convenience wrapper: x (..., in); w1 (in, 2*hidden); w2 (hidden, out).

    For production use, call make_swiglu_plan + pack_swiglu_weights once at
    init and swiglu_ffn_apply per forward — this wrapper re-packs the weights
    (two full-weight HBM copies) on every call.
    """
    in_features = x.shape[-1]
    hidden, out_features = w2.shape
    assert w1.shape == (in_features, 2 * hidden)
    plan = make_swiglu_plan(in_features, hidden, out_features, x.dtype,
                            tm=tm, th=th, compute_dtype=compute_dtype)
    w1_packed, w2_packed = pack_swiglu_weights(w1, w2, plan)
    return swiglu_ffn_apply(x, w1_packed, w2_packed, plan)


def swiglu_ffn_ref(x, w1, w2):
    h = x @ w1
    hidden = w2.shape[0]
    a, b = h[..., :hidden], h[..., hidden:]
    return (jax.nn.silu(a) * b) @ w2


if __name__ == "__main__":
    # ---- Test 1: small f32 config consistent with the module --------------
    # in=32, hidden_features=32 -> fused hidden = (int(32*2/3)+7)//8*8 = 24,
    # out = in = 32, bias=False, drop=0.0.
    batch, seq, in_features = 2, 8, 32
    hidden = _swiglu_hidden(32)        # 24
    out_features = in_features         # 32

    key = jax.random.PRNGKey(0)
    kx, k1, k2, kx2, k12, k22 = jax.random.split(key, 6)
    x = jax.random.normal(kx, (batch, seq, in_features), dtype=jnp.float32)
    w1 = jax.random.normal(k1, (in_features, 2 * hidden), dtype=jnp.float32) * 0.05
    w2 = jax.random.normal(k2, (hidden, out_features), dtype=jnp.float32) * 0.05

    y = swiglu_ffn_fused(x, w1, w2)
    y = jax.block_until_ready(y)
    y_ref = swiglu_ffn_ref(x, w1, w2)
    assert y.shape == (batch, seq, out_features)
    assert jnp.allclose(y, y_ref, atol=1e-4, rtol=1e-4), "mismatch vs reference (f32)"

    # ---- Test 2: bf16, multi-block grid (exercises tiling + accumulation) --
    in2 = 256
    hid2 = _swiglu_hidden(512)         # 344 -> padded to 384 with th=128
    out2 = 256
    x2 = (jax.random.normal(kx2, (4, 80, in2), dtype=jnp.float32) * 1.0).astype(jnp.bfloat16)
    w1_2 = (jax.random.normal(k12, (in2, 2 * hid2), dtype=jnp.float32) * 0.05).astype(jnp.bfloat16)
    w2_2 = (jax.random.normal(k22, (hid2, out2), dtype=jnp.float32) * 0.05).astype(jnp.bfloat16)

    plan2 = make_swiglu_plan(in2, hid2, out2, x2.dtype, tm=128, th=128)
    w1p2, w2p2 = pack_swiglu_weights(w1_2, w2_2, plan2)     # packed once (init)
    y2 = swiglu_ffn_apply(x2, w1p2, w2p2, plan2)            # hot path
    y2 = jax.block_until_ready(y2)

    y2_ref = swiglu_ffn_ref(x2.astype(jnp.float32), w1_2.astype(jnp.float32),
                            w2_2.astype(jnp.float32))
    assert y2.shape == (4, 80, out2)
    # bf16 math (gated re-cast + bf16 output store); loose tolerance catches
    # any tiling/accumulation bug (which would produce O(1) errors).
    assert jnp.allclose(y2.astype(jnp.float32), y2_ref, atol=1e-1, rtol=1e-1), \
        "mismatch vs reference (bf16, tiled)"

    print("KERNEL_OK")
</pallas_src>

<mosaic_0001>
module attributes {stable_mosaic.version = 11 : i64} {
  func.func @swiglu_ffn_kernel(%arg0: i32, %arg1: i32, %arg2: memref<16x32xf32, #tpu.memory_space<vmem>>, %arg3: memref<32x256xf32, #tpu.memory_space<vmem>>, %arg4: memref<128x128xf32, #tpu.memory_space<vmem>>, %arg5: memref<16x128xf32, #tpu.memory_space<vmem>>, %arg6: memref<16x128xf32, #tpu.memory_space<vmem>>) attributes {dimension_semantics = [#tpu.dimension_semantics<parallel>, #tpu.dimension_semantics<arbitrary>], iteration_bounds = array<i64: 1, 1>, scalar_prefetch = 0 : i64, scratch_operands = 1 : i64, tpu.core_type = #tpu.core_type<tc>, window_params = [{transform_indices = @transform_0, window_bounds = array<i64: 16, 32>}, {transform_indices = @transform_1, window_bounds = array<i64: 32, 256>}, {transform_indices = @transform_2, window_bounds = array<i64: 128, 128>}, {transform_indices = @transform_3, window_bounds = array<i64: 16, 128>}]} {
    %c0 = arith.constant 0 : index
    %c0_0 = arith.constant 0 : index
    %0 = vector.load %arg2[%c0, %c0_0] : memref<16x32xf32, #tpu.memory_space<vmem>>, vector<16x32xf32>
    %c0_1 = arith.constant 0 : index
    %c0_2 = arith.constant 0 : index
    %1 = vector.load %arg3[%c0_1, %c0_2] : memref<32x256xf32, #tpu.memory_space<vmem>>, vector<32x256xf32>
    %cst = arith.constant dense<0.000000e+00> : vector<16x256xf32>
    %2 = tpu.matmul %0, %1, %cst {dimension_numbers = #tpu.dot_dimension_numbers<[1], [0], [0], [1], [0, 0, 1, 1], [], []>} : vector<16x32xf32>, vector<32x256xf32>, vector<16x256xf32> -> vector<16x256xf32>
    %3 = vector.extract_strided_slice %2 {offsets = [0, 0], sizes = [16, 128], strides = [1, 1]} : vector<16x256xf32> to vector<16x128xf32>
    %4 = vector.extract_strided_slice %2 {offsets = [0, 128], sizes = [16, 128], strides = [1, 1]} : vector<16x256xf32> to vector<16x128xf32>
    %5 = arith.negf %3 : vector<16x128xf32>
    %6 = math.exp %5 : vector<16x128xf32>
    %cst_3 = arith.constant 1.000000e+00 : f32
    %7 = vector.broadcast %cst_3 : f32 to vector<16x128xf32>
    %8 = arith.addf %7, %6 : vector<16x128xf32>
    %9 = arith.divf %7, %8 : vector<16x128xf32>
    %10 = arith.mulf %3, %9 : vector<16x128xf32>
    %11 = arith.mulf %10, %4 : vector<16x128xf32>
    %c0_4 = arith.constant 0 : index
    %c0_5 = arith.constant 0 : index
    %12 = vector.load %arg4[%c0_4, %c0_5] : memref<128x128xf32, #tpu.memory_space<vmem>>, vector<128x128xf32>
    %cst_6 = arith.constant dense<0.000000e+00> : vector<16x128xf32>
    %13 = tpu.matmul %11, %12, %cst_6 {dimension_numbers = #tpu.dot_dimension_numbers<[1], [0], [0], [1], [0, 0, 1, 1], [], []>} : vector<16x128xf32>, vector<128x128xf32>, vector<16x128xf32> -> vector<16x128xf32>
    %c0_i32 = arith.constant 0 : i32
    %14 = arith.cmpi eq, %arg1, %c0_i32 : i32
    %15 = arith.extui %14 : i1 to i32
    %c0_i32_7 = arith.constant 0 : i32
    %16 = arith.cmpi ne, %15, %c0_i32_7 : i32
    scf.if %16 {
      %c0_12 = arith.constant 0 : index
      %c0_13 = arith.constant 0 : index
      %23 = vector.load %arg6[%c0_12, %c0_13] : memref<16x128xf32, #tpu.memory_space<vmem>>, vector<16x128xf32>
      tpu.vector_store %arg6[%c0_12, %c0_13], %13 {strides = array<i32>} : memref<16x128xf32, #tpu.memory_space<vmem>>, vector<16x128xf32>,
    } else {
    }
    %c0_i32_8 = arith.constant 0 : i32
    %17 = arith.cmpi sgt, %arg1, %c0_i32_8 : i32
    %18 = arith.extui %17 : i1 to i32
    %c0_i32_9 = arith.constant 0 : i32
    %19 = arith.cmpi ne, %18, %c0_i32_9 : i32
    scf.if %19 {
      %c0_12 = arith.constant 0 : index
      %c0_13 = arith.constant 0 : index
      %23 = vector.load %arg6[%c0_12, %c0_13] : memref<16x128xf32, #tpu.memory_space<vmem>>, vector<16x128xf32>
      %24 = arith.addf %23, %13 : vector<16x128xf32>
      %c0_14 = arith.constant 0 : index
      %c0_15 = arith.constant 0 : index
      %25 = vector.load %arg6[%c0_14, %c0_15] : memref<16x128xf32, #tpu.memory_space<vmem>>, vector<16x128xf32>
      tpu.vector_store %arg6[%c0_14, %c0_15], %24 {strides = array<i32>} : memref<16x128xf32, #tpu.memory_space<vmem>>, vector<16x128xf32>,
    } else {
    }
    %c0_i32_10 = arith.constant 0 : i32
    %20 = arith.cmpi eq, %arg1, %c0_i32_10 : i32
    %21 = arith.extui %20 : i1 to i32
    %c0_i32_11 = arith.constant 0 : i32
    %22 = arith.cmpi ne, %21, %c0_i32_11 : i32
    scf.if %22 {
      %c0_12 = arith.constant 0 : index
      %c0_13 = arith.constant 0 : index
      %23 = vector.load %arg6[%c0_12, %c0_13] : memref<16x128xf32, #tpu.memory_space<vmem>>, vector<16x128xf32>
      %c0_14 = arith.constant 0 : index
      %c0_15 = arith.constant 0 : index
      %24 = vector.load %arg5[%c0_14, %c0_15] : memref<16x128xf32, #tpu.memory_space<vmem>>, vector<16x128xf32>
      tpu.vector_store %arg5[%c0_14, %c0_15], %23 {strides = array<i32>} : memref<16x128xf32, #tpu.memory_space<vmem>>, vector<16x128xf32>,
    } else {
    }
    return
  }
  func.func @transform_0(%arg0: i32, %arg1: i32) -> (i32, i32) {
    %c0_i32 = arith.constant 0 : i32
    %c0_i32_0 = arith.constant 0 : i32
    return %arg0, %c0_i32 : i32, i32
  }
  func.func @transform_1(%arg0: i32, %arg1: i32) -> (i32, i32) {
    %c0_i32 = arith.constant 0 : i32
    %c0_i32_0 = arith.constant 0 : i32
    return %c0_i32, %arg1 : i32, i32
  }
  func.func @transform_2(%arg0: i32, %arg1: i32) -> (i32, i32) {
    %c0_i32 = arith.constant 0 : i32
    %c0_i32_0 = arith.constant 0 : i32
    return %arg1, %c0_i32 : i32, i32
  }
  func.func @transform_3(%arg0: i32, %arg1: i32) -> (i32, i32) {
    %c0_i32 = arith.constant 0 : i32
    %c0_i32_0 = arith.constant 0 : i32
    return %arg0, %c0_i32 : i32, i32
  }
}

</mosaic_0001>

<bundles_post_ra>
// kernel: tpu_custom_call.1
= control target key start
LH: loop header
LB: loop body
LE: loop exit
PB: predicated region body
PF: predicated region fallthrough
CT: control target
= control target key end

     0   :  { %8 = vsyncpa [#allocation4], 0  ;;  %s438_s0 = inlined_call_operand.hbm [shape: f32[16,32], index: 0, kind: input, shape index: {}]   ;;  %s439_s1 = inlined_call_operand.hbm [shape: f32[32,256], index: 1, kind: input, shape index: {}]   ;;  %s440_s2 = inlined_call_operand.hbm [shape: f32[128,128], index: 2, kind: input, shape index: {}]   ;;  %s441_s3 = inlined_call_operand.hbm [shape: f32[16,128], index: 3, kind: output, shape index: {}]  }
   0x1   :  { %9 = vsyncpa [#allocation7], 0  ;;  %s28_s14 = sshll.u32 %s439_s1, 4  ;;  %s29_s14 = int_to_ptr.hbm [resolvable:$true] %s28_s14 }
   0x2   :  { %10 = vsyncpa [#allocation5], 0  ;;  %s389_s15 = smov [#allocation6]   ;;  %s15_s19 = sshll.u32 %s438_s0, 4  ;;  %s16_s19 = int_to_ptr.hbm [resolvable:$true] %s15_s19 }
   0x3   :  { %s30_s16 = sshll.u32 %s389_s15, 4  ;;  %s390_s20 = smov 256   ;;  %s31_s16 = int_to_ptr.vmem [resolvable:$true] %s30_s16 }
   0x4   :  { %s391_s21 = smov 16   ;;  %s392_s22 = smov [#allocation3]  }
   0x5   :  { %36 = dma.hbm_to_vmem [thread:$0]  %s29_s14, 1024, %s31_s16, [#allocation7], %s390_s20, %s390_s20, %s391_s21  }
   0x6   :  { %s17_s23 = sshll.u32 %s392_s22, 4  ;;  %s393_s24 = smov 128   ;;  %s18_s23 = int_to_ptr.vmem [resolvable:$true] %s17_s23 }
   0x7   :  { %s394_s25 = smov 8   ;;  %s41_s27 = sshll.u32 %s440_s2, 4  ;;  %s42_s27 = int_to_ptr.hbm [resolvable:$true] %s41_s27 }
   0x8   :  { %23 = dma.hbm_to_vmem [thread:$0]  %s16_s19, 256, %s18_s23, [#allocation4], %s393_s24, %s393_s24, %s394_s25  }
   0x9   :  { %s395_s28 = smov [#allocation8]  }
   0xa   :  { %s43_s0 = sshll.u32 %s395_s28, 4  ;;  %s44_s0 = int_to_ptr.vmem [resolvable:$true] %s43_s0 }
   0xb   :  { %49 = dma.hbm_to_vmem [thread:$0]  %s42_s27, 2048, %s44_s0, [#allocation7], %s393_s24, %s393_s24, %s394_s25  }
   0xc   :  { %383 = dma.done.wait [#allocation4], 256  }
   0xd   :  { %384 = vsyncadd [#allocation4], 4294967040 }
   0xe   :  { %385 = dma.done.wait [#allocation7], 3072  }
   0xf   :  { %386 = vsyncadd [#allocation7], 4294964224  ;;  %v70_v0 = vld [vmem:[#allocation6 + $0x30] sm:$0xff]  ;;  %v68_v1 = vld [vmem:[#allocation6 + $0x20] sm:$0xff]  ;;  %vm72_vm0 = vcmask 261120   ;;  %s396_s2 = smov [#allocation9]  }
  0x10   :  { %91 = vmatpush.msra.mxu0 %v70_v0  ;;  %v66_v2 = vld [vmem:[#allocation6 + $0x10] sm:$0xff]  ;;  %v71_v3 = vld [vmem:[#allocation6 + $0x38] sm:$0xff]  ;;  %v69_v4 = vld [vmem:[#allocation6 + $0x28] sm:$0xff]  ;;  %s233_s29 = sshll.u32 %s396_s2, 4  ;;  %s235_s5 = sshll.u32 %s441_s3, 4  ;;  %s234_s29 = int_to_ptr.vmem [resolvable:$true] %s233_s29  ;;  %s236_s5 = int_to_ptr.hbm [resolvable:$true] %s235_s5 }
  0x11   :  { %114 = vmatpush.msra.mxu1 %v71_v3  ;;  %v64_v5 = vld [vmem:[#allocation6] sm:$0xff]  ;;  %v67_v6 = vld [vmem:[#allocation6 + $0x18] sm:$0xff]  ;;  %v62_v7 = vld [vmem:[#allocation3] sm:$0xff] }
  0x12   :  { %92 = vmatpush.msra.mxu0 %v68_v1  ;;  %v65_v8 = vld [vmem:[#allocation6 + $0x8] sm:$0xff]  ;;  %v63_v9 = vld [vmem:[#allocation3 + $0x8] sm:$0xff]  ;;  %v181_v11 = vld [vmem:[#allocation8 + $0x70] sm:$0xff] }
  0x13   :  { %115 = vmatpush.msra.mxu1 %v69_v4  ;;  %v182_v10 = vld [vmem:[#allocation8 + $0x78] sm:$0xff]  ;;  %v180_v12 = vld [vmem:[#allocation8 + $0x68] sm:$0xff]  ;;  %v179_v13 = vld [vmem:[#allocation8 + $0x60] sm:$0xff] }
  0x14   :  { %93 = vmatpush.msra.mxu0 %v66_v2  ;;  %183 = vmatpush.msra.mxu2 %v182_v10  ;;  %v178_v14 = vld [vmem:[#allocation8 + $0x58] sm:$0xff]  ;;  %v177_v15 = vld [vmem:[#allocation8 + $0x50] sm:$0xff]  ;;  %v176_v16 = vld [vmem:[#allocation8 + $0x48] sm:$0xff] }
  0x15   :  { %116 = vmatpush.msra.mxu1 %v67_v6  ;;  %255 = vmatpush.msra.mxu3 %v182_v10  ;;  %v175_v17 = vld [vmem:[#allocation8 + $0x40] sm:$0xff]  ;;  %v174_v18 = vld [vmem:[#allocation8 + $0x38] sm:$0xff]  ;;  %v173_v19 = vld [vmem:[#allocation8 + $0x30] sm:$0xff] }
  0x16   :  { %94 = vmatpush.msra.mxu0 %v64_v5  ;;  %184 = vmatpush.msra.mxu2 %v181_v11  ;;  %v172_v20 = vld [vmem:[#allocation8 + $0x28] sm:$0xff]  ;;  %v171_v21 = vld [vmem:[#allocation8 + $0x20] sm:$0xff]  ;;  %v170_v22 = vld [vmem:[#allocation8 + $0x18] sm:$0xff] }
  0x17   :  { %249 = vmatmul.msk.f32.vlgmr.msra.gmra.mxu0 %vm72_vm0, %v62_v7  ;;  %117 = vmatpush.msra.mxu1 %v65_v8  ;;  %v169_v23 = vld [vmem:[#allocation8 + $0x10] sm:$0xff]  ;;  %v168_v24 = vld [vmem:[#allocation8 + $0x8] sm:$0xff]  ;;  %v167_v25 = vld [vmem:[#allocation8] sm:$0xff] }
  0x18   :  { %251 = vmatmul.msk.f32.vlgmr.msra.gmra.mxu1 %vm72_vm0, %v62_v7  ;;  %256 = vmatpush.msra.mxu3 %v181_v11 }
  0x19   :  { %185 = vmatpush.msra.mxu2 %v180_v12 }
  0x1a   :  { %257 = vmatpush.msra.mxu3 %v180_v12 }
  0x1b   :  { %186 = vmatpush.msra.mxu2 %v179_v13 }
  0x1c   :  { %258 = vmatpush.msra.mxu3 %v179_v13 }
  0x1d   :  { %187 = vmatpush.msra.mxu2 %v178_v14 }
  0x1e   :  { %259 = vmatpush.msra.mxu3 %v178_v14 }
  0x1f   :  { %250 = vmatmul.msk.f32.gmra.mxu0 %vm72_vm0, %v63_v9  ;;  %188 = vmatpush.msra.mxu2 %v177_v15 }
  0x20   :  { %252 = vmatmul.msk.f32.gmra.mxu1 %vm72_vm0, %v63_v9  ;;  %260 = vmatpush.msra.mxu3 %v177_v15 }
  0x21   :  { %189 = vmatpush.msra.mxu2 %v176_v16 }
  0x22   :  { %261 = vmatpush.msra.mxu3 %v176_v16 }
  0x23   :  { %190 = vmatpush.msra.mxu2 %v175_v17 }
  0x24   :  { %262 = vmatpush.msra.mxu3 %v175_v17 }
  0x25   :  { %191 = vmatpush.msra.mxu2 %v174_v18 }
  0x26   :  { %263 = vmatpush.msra.mxu3 %v174_v18 }
  0x27   :  { %192 = vmatpush.msra.mxu2 %v173_v19 }
  0x28   :  { %264 = vmatpush.msra.mxu3 %v173_v19 }
  0x29   :  { %193 = vmatpush.msra.mxu2 %v172_v20 }
  0x2a   :  { %265 = vmatpush.msra.mxu3 %v172_v20 }
  0x2b   :  { %194 = vmatpush.msra.mxu2 %v171_v21 }
  0x2c   :  { %266 = vmatpush.msra.mxu3 %v171_v21 }
  0x2d   :  { %195 = vmatpush.msra.mxu2 %v170_v22 }
  0x2e   :  { %267 = vmatpush.msra.mxu3 %v170_v22 }
  0x2f   :  { %196 = vmatpush.msra.mxu2 %v169_v23 }
  0x30   :  { %268 = vmatpush.msra.mxu3 %v169_v23 }
  0x31   :  { %197 = vmatpush.msra.mxu2 %v168_v24 }
  0x32   :  { %269 = vmatpush.msra.mxu3 %v168_v24 }
  0x33   :  { %198 = vmatpush.msra.mxu2 %v167_v25 }
  0x34   :  { %270 = vmatpush.msra.mxu3 %v167_v25 }
  0x94   :  { %v96_v26 = vpop.f32.mrf.mxu0 }
  0x95   :  { %v253_v27 = vmul.f32 -1.442695, %v96_v26  ;;  %v119_v43 = vpop.f32.mrf.mxu1 }
  0x97   :  { %279 = vpow2.f32 %v253_v27 }
  0x9c   :  { %v99_v28 = vpop.f32.mrf.mxu0 }
  0x9d   :  { %v280_v29 = vpop.eup %279  ;;  %v254_v30 = vmul.f32 -1.442695, %v99_v28  ;;  %v122_v57 = vpop.f32.mrf.mxu1 }
  0x9e   :  { %v131_v31 = vadd.f32 1.0, %v280_v29 }
  0x9f   :  { %281 = vpow2.f32 %v254_v30 }
  0xa0   :  { %283 = vrcp.f32 %v131_v31  ;;  %v144_v37 = vand.u32 2147483648, %v131_v31  ;;  %v142_v39 = vand.u32 2147483647, %v131_v31  ;;  %vm138_vm2 = vweird.f32 %v131_v31 }
  0xa2   :  { %v145_v42 = vor.u32 1.1754944e-38, %v144_v37  ;;  %vm143_vm4 = vcmp.eq.f32.partialorder %v142_v39, 8.507059e+37 }
  0xa5   :  { %v282_v32 = vpop.eup %281 }
  0xa6   :  { %v284_v33 = vpop.eup %283  ;;  %v132_v34 = vadd.f32 1.0, %v282_v32 }
  0xa7   :  { %v134_v35 = vmul.f32 %v284_v33, %v131_v31  ;;  %vm139_vm1 = vweird.f32 %v284_v33 }
  0xa8   :  { %285 = vrcp.f32 %v132_v34  ;;  %vm140_vm3 = vmor %vm138_vm2, %vm139_vm1  ;;  %v159_v49 = vand.u32 2147483648, %v132_v34  ;;  %v157_v51 = vand.u32 2147483647, %v132_v34  ;;  %vm153_vm6 = vweird.f32 %v132_v34 }
  0xa9   :  { %v135_v36 = vsub.f32 1.0, %v134_v35 }
  0xaa   :  { %v160_v54 = vor.u32 1.1754944e-38, %v159_v49  ;;  %vm158_vm8 = vcmp.eq.f32.partialorder %v157_v51, 8.507059e+37 }
  0xab   :  { %v136_v38 = vmul.f32 %v284_v33, %v135_v36 }
  0xad   :  { %v137_v40 = vadd.f32 %v284_v33, %v136_v38 }
  0xae   :  { %v286_v41 = vpop.eup %285 }
  0xaf   :  { %v141_v44 = vsel %vm140_vm3, %v284_v33, %v137_v40  ;;  %v149_v45 = vmul.f32 %v286_v41, %v132_v34  ;;  %vm154_vm5 = vweird.f32 %v286_v41 }
  0xb0   :  { %v146_v46 = vsel %vm143_vm4, %v145_v42, %v141_v44  ;;  %vm155_vm7 = vmor %vm153_vm6, %vm154_vm5 }
  0xb1   :  { %v163_v47 = vmul.f32 %v146_v46, %v96_v26  ;;  %v150_v48 = vsub.f32 1.0, %v149_v45 }
  0xb3   :  { %v151_v50 = vmul.f32 %v286_v41, %v150_v48  ;;  %v165_v52 = vmul.f32 %v163_v47, %v119_v43 }
  0xb5   :  { %v152_v53 = vadd.f32 %v286_v41, %v151_v50  ;;  %199 = vmatmul.f32.vlgmr.msra.gmra.mxu2 %v165_v52 }
  0xb7   :  { %v156_v55 = vsel %vm155_vm7, %v286_v41, %v152_v53 }
  0xb8   :  { %v161_v56 = vsel %vm158_vm8, %v160_v54, %v156_v55 }
  0xb9   :  { %v164_v58 = vmul.f32 %v161_v56, %v99_v28 }
  0xbb   :  { %v166_v59 = vmul.f32 %v164_v58, %v122_v57 }
  0xbd   :  { %202 = vmatmul.f32.vlgmr.msra.gmra.mxu3 %v166_v59 }
 0x138   :  { %v200_v60 = vpop.f32.mrf.mxu2 }
 0x139   :  { %227 = vst [vmem:[#allocation9] sm:$0xff] %v200_v60 }
 0x140   :  { %v203_v61 = vpop.f32.mrf.mxu3 }
 0x141   :  { %228 = vst [vmem:[#allocation9 + $0x8] sm:$0xff] %v203_v61 }
 0x142   :  { %241 = dma.vmem_to_hbm [thread:$0]  %s234_s29, 256, %s236_s5, [#allocation5], %s393_s24, %s393_s24, %s394_s25  }
 0x143   :  { %387 = dma.done.wait [#allocation5], 256  }
 0x144   :  { %388 = vsyncadd [#allocation5], 4294967040 }
 0x145   :  { %246 = vsyncpa [#allocation4], 1 }
 0x146   :  { %247 = vsyncpa [#allocation7], 1 }
 0x147   :  { %248 = vsyncpa [#allocation5], 1 }

</bundles_post_ra>
